<compile_context>
chip_gen: v6e
topology: v6e:2x2x1
jax: 0.10.0
libtpu: 0.0.40
codegen_flags: <defaults>
</compile_context>

<pallas_src>
import functools

import numpy as np
import jax
import jax.numpy as jnp
from jax.experimental import pallas as pl
from jax.experimental.pallas import tpu as pltpu

# ---- module hyper-parameters (from DMap_Loss.__init__) ----------------------
STRIDE = 2
RADIUS = 8
WINDOW_SIZE = 2 * RADIUS + 1            # 17
PADDING = WINDOW_SIZE // 2 + 1          # 9
WEIGHT_CNT = 10
SIGMA = 4.0
TRUNCATE = 4.0                          # scipy gaussian_filter default


# ------------------------------ host-side constants --------------------------
@functools.lru_cache(maxsize=None)
def _gauss_reflect_matrix(n, sigma=SIGMA, truncate=TRUNCATE):
    """(n, n) matrix equal to scipy.ndimage.gaussian_filter1d(..., mode='reflect')
    along one axis: banded gaussian correlation matrix with the symmetric
    ('reflect') boundary columns folded into the interior band.  Built once per
    spatial size and embedded as a jit constant."""
    r = int(truncate * sigma + 0.5)                      # 16 for sigma=4
    x = np.arange(-r, r + 1, dtype=np.float64)
    g = np.exp(-0.5 * x * x / (sigma * sigma))
    g = g / g.sum()
    band = np.zeros((n, n + 2 * r), np.float64)
    for i in range(n):
        band[i, i:i + 2 * r + 1] = g
    # scipy 'reflect' boundary == numpy 'symmetric' padding; fold it in.
    idx = np.pad(np.arange(n), r, mode='symmetric')      # (n + 2r,)
    proj = np.zeros((n + 2 * r, n), np.float64)
    proj[np.arange(n + 2 * r), idx] = 1.0
    return (band @ proj).astype(np.float32)              # (n, n)


# ------------------------------ in-kernel helpers -----------------------------
def _quantize_fp16(x):
    """Emulate x.astype(float16).astype(float32) (round-to-nearest-even) for
    non-negative inputs far below fp16 max, using only uint32 bit ops and f32
    adds so the kernel does not depend on Mosaic float16 support."""
    u = pltpu.bitcast(x, jnp.uint32)
    lsb = (u >> 13) & jnp.uint32(1)
    rounded = (u + jnp.uint32(0x0FFF) + lsb) & jnp.uint32(0xFFFFE000)
    normal = pltpu.bitcast(rounded, jnp.float32)
    # fp16 subnormal range [0, 2^-14): uniform quantum 2^-24.  ulp(0.5) = 2^-24
    # in f32, so (x + 0.5) - 0.5 rounds x onto that grid with RNE.
    sub = (x + jnp.float32(0.5)) - jnp.float32(0.5)
    return jnp.where(x >= jnp.float32(6.103515625e-05), normal, sub)


# ------------------------------ fused Pallas kernel ---------------------------
def _dmap_loss_kernel(pm_ref, pred_ref, a_h_ref, a_wT_ref, out_ref):
    # pm_ref:   (1, H, W)    f32 impulse map of this batch element
    # pred_ref: (1, C, H, W) f32 predicted counting map (unpadded)
    # a_h_ref:  (H, H) f32, a_wT_ref: (W, W) f32 (reflect boundary folded in)
    # out_ref:  (1, 8, 128)  f32: [0,0,0]=SSE, [0,0,1]=sum(pred), [0,0,2]=sum(gt)
    pm = pm_ref[0]                                        # (H, W) f32

    # gaussian_filter(sigma=4, mode='reflect') as two f32 MXU matmuls:
    # (H,H)@(H,W) -> (H,W); then (H,W)@(W,W) -> (H,W).
    tmp = jnp.dot(a_h_ref[...], pm, preferred_element_type=jnp.float32)
    gt = jnp.dot(tmp, a_wT_ref[...], preferred_element_type=jnp.float32)
    gt = _quantize_fp16(gt)                               # torch `.half()` round trip

    # Zero padding of pred / gt cannot change the SSE or the sums, so we reduce
    # over the unpadded maps; the MSE denominator (C*Hp*Wp) is applied outside.
    C = pred_ref.shape[1]
    sse = jnp.float32(0.0)
    sum_pred = jnp.float32(0.0)
    # Per-channel pass (C is static) avoids a (C, H, W) broadcast temporary.
    for c in range(C):
        p = pred_ref[0, c]                                # (H, W) f32
        d = p - gt
        sse = sse + jnp.sum(d * d)
        sum_pred = sum_pred + jnp.sum(p)
    sum_gt = jnp.sum(gt)

    # Pack the three scalars into one lane-aligned (8, 128) output tile.
    lane = jax.lax.broadcasted_iota(jnp.int32, (8, 128), 1)
    sub = jax.lax.broadcasted_iota(jnp.int32, (8, 128), 0)
    row0 = sub == 0
    tile = jnp.where(row0 & (lane == 0), sse,
           jnp.where(row0 & (lane == 1), sum_pred,
           jnp.where(row0 & (lane == 2), sum_gt, jnp.float32(0.0))))
    out_ref[0] = tile


# ------------------------------ wrapper ---------------------------------------
def _dmap_loss_impl(predict, points, num):
    """predict: (B, C, H, W) f32; points: (B, maxN, 2) f32 (x, y); num: (B,) int."""
    B, C, H, W = predict.shape
    Hp, Wp = H + 2 * PADDING, W + 2 * PADDING
    maxN = points.shape[1]

    a_h = jnp.asarray(_gauss_reflect_matrix(H), jnp.float32)       # (H, H)
    a_wT = jnp.asarray(_gauss_reflect_matrix(W).T, jnp.float32)    # (W, W)

    # Build all B impulse maps with one masked scatter (num used as length mask).
    pts = jnp.round(jnp.flip(points, axis=-1) / STRIDE).astype(jnp.int32)  # (B,maxN,2) (y,x)
    valid = jnp.arange(maxN)[None, :] < num[:, None]
    yy = jnp.where(valid, pts[..., 0], H)       # invalid -> out of range -> dropped
    xx = jnp.where(valid, pts[..., 1], W)
    bb = jnp.broadcast_to(jnp.arange(B)[:, None], (B, maxN))
    # TODO(synk): genuinely out-of-range points are dropped here; the numpy
    # reference would wrap negative indices / raise on too-large ones.
    point_maps = jnp.zeros((B, H, W), jnp.float32).at[bb, yy, xx].set(
        1.0, mode='drop')

    res = pl.pallas_call(
        _dmap_loss_kernel,
        out_shape=jax.ShapeDtypeStruct((B, 8, 128), jnp.float32),
        grid=(B,),
        in_specs=[
            pl.BlockSpec((1, H, W), lambda b: (b, 0, 0)),
            pl.BlockSpec((1, C, H, W), lambda b: (b, 0, 0, 0)),
            pl.BlockSpec((H, H), lambda b: (0, 0)),
            pl.BlockSpec((W, W), lambda b: (0, 0)),
        ],
        out_specs=pl.BlockSpec((1, 8, 128), lambda b: (b, 0, 0)),
        compiler_params=pltpu.CompilerParams(
            dimension_semantics=("parallel",),
            vmem_limit_bytes=32 * 1024 * 1024),
    )(point_maps, predict, a_h, a_wT)

    sse = res[:, 0, 0]            # (B,)
    sum_pred = res[:, 0, 1]
    sum_gt = res[:, 0, 2]

    # Reference semantics: the loop overwrites loss_dmap / loss_cnt, so the
    # returned 'dmap' comes from the LAST batch element with num[b] > 0, and
    # 'cnt' pairs that gt with the LAST batch element's prediction.
    valid_b = num > 0
    last_valid = jnp.max(jnp.where(valid_b, jnp.arange(B), -1))
    has_valid = last_valid >= 0
    lv = jnp.maximum(last_valid, 0)

    loss_dmap = sse[lv] / (C * Hp * Wp)                      # mse, reduction='mean'
    loss_cnt = jnp.abs(sum_gt[lv] - sum_pred[B - 1]) / H / W
    zero = jnp.float32(0.0)
    # TODO(synk): if every num[b] == 0 the reference raises NameError; we
    # return zeros instead to stay jittable.
    loss_dmap = jnp.where(has_valid, loss_dmap, zero)
    loss_cnt = jnp.where(has_valid, loss_cnt, zero)

    # TODO(synk): `loss_bg` / `loss_ann` are computed-but-unused in the
    # reference (never stored into loss_dict); omitted.
    loss_dict = {'ann': zero, 'bg': zero}
    loss_dict['dmap'] = loss_dmap / B
    loss_dict['cnt'] = loss_cnt
    loss_dict['all'] = WEIGHT_CNT * (loss_dict['dmap'] + loss_dict['cnt'])
    return loss_dict


dmap_loss = jax.jit(_dmap_loss_impl)


# ------------------------------ demo -------------------------------------------
if __name__ == "__main__":
    key = jax.random.PRNGKey(0)
    B, C, H, W = 2, 4, 16, 16
    maxN = 8

    k1, k2 = jax.random.split(key)
    predict = 0.1 * jax.random.normal(k1, (B, C, H, W), jnp.float32)
    # points in original-image coords (x, y); round(pt / stride) stays inside [0, H)
    points = jax.random.uniform(k2, (B, maxN, 2), jnp.float32,
                                minval=0.0, maxval=float((H - 1) * STRIDE))
    num = jnp.array([3, 5], jnp.int32)

    out = dmap_loss(predict, points, num)
    jax.block_until_ready((out['dmap'], out['cnt'], out['all']))
    print("KERNEL_OK")
</pallas_src>

<mosaic_0001>
module attributes {stable_mosaic.version = 11 : i64} {
  func.func @_dmap_loss_kernel(%arg0: i32, %arg1: memref<1x16x16xf32, #tpu.memory_space<vmem>>, %arg2: memref<1x4x16x16xf32, #tpu.memory_space<vmem>>, %arg3: memref<16x16xf32, #tpu.memory_space<vmem>>, %arg4: memref<16x16xf32, #tpu.memory_space<vmem>>, %arg5: memref<1x8x128xf32, #tpu.memory_space<vmem>>) attributes {dimension_semantics = [#tpu.dimension_semantics<parallel>], iteration_bounds = array<i64: 2>, scalar_prefetch = 0 : i64, scratch_operands = 0 : i64, tpu.core_type = #tpu.core_type<tc>, window_params = [{transform_indices = @transform_0, window_bounds = array<i64: 1, 16, 16>}, {transform_indices = @transform_1, window_bounds = array<i64: 1, 4, 16, 16>}, {pipeline_mode = #tpu.pipeline_mode<synchronous>, transform_indices = @transform_2, window_bounds = array<i64: 16, 16>}, {pipeline_mode = #tpu.pipeline_mode<synchronous>, transform_indices = @transform_3, window_bounds = array<i64: 16, 16>}, {transform_indices = @transform_4, window_bounds = array<i64: 1, 8, 128>}]} {
    %c0 = arith.constant 0 : index
    %c0_0 = arith.constant 0 : index
    %c0_1 = arith.constant 0 : index
    %0 = vector.load %arg1[%c0, %c0_0, %c0_1] : memref<1x16x16xf32, #tpu.memory_space<vmem>>, vector<1x16x16xf32>
    %1 = vector.shape_cast %0 : vector<1x16x16xf32> to vector<16x16xf32>
    %c0_2 = arith.constant 0 : index
    %c0_3 = arith.constant 0 : index
    %2 = vector.load %arg3[%c0_2, %c0_3] : memref<16x16xf32, #tpu.memory_space<vmem>>, vector<16x16xf32>
    %cst = arith.constant dense<0.000000e+00> : vector<16x16xf32>
    %3 = tpu.matmul %2, %1, %cst {dimension_numbers = #tpu.dot_dimension_numbers<[1], [0], [0], [1], [0, 0, 1, 1], [], []>} : vector<16x16xf32>, vector<16x16xf32>, vector<16x16xf32> -> vector<16x16xf32>
    %c0_4 = arith.constant 0 : index
    %c0_5 = arith.constant 0 : index
    %4 = vector.load %arg4[%c0_4, %c0_5] : memref<16x16xf32, #tpu.memory_space<vmem>>, vector<16x16xf32>
    %cst_6 = arith.constant dense<0.000000e+00> : vector<16x16xf32>
    %5 = tpu.matmul %3, %4, %cst_6 {dimension_numbers = #tpu.dot_dimension_numbers<[1], [0], [0], [1], [0, 0, 1, 1], [], []>} : vector<16x16xf32>, vector<16x16xf32>, vector<16x16xf32> -> vector<16x16xf32>
    %6 = tpu.bitcast %5 : vector<16x16xf32> -> vector<16x16xi32>
    %c13_i32 = arith.constant 13 : i32
    %7 = vector.broadcast %c13_i32 : i32 to vector<16x16xi32>
    %8 = arith.shrui %6, %7 : vector<16x16xi32>
    %c1_i32 = arith.constant 1 : i32
    %9 = vector.broadcast %c1_i32 : i32 to vector<16x16xi32>
    %10 = arith.andi %8, %9 : vector<16x16xi32>
    %c4095_i32 = arith.constant 4095 : i32
    %11 = vector.broadcast %c4095_i32 : i32 to vector<16x16xi32>
    %12 = arith.addi %6, %11 : vector<16x16xi32>
    %13 = arith.addi %12, %10 : vector<16x16xi32>
    %c-8192_i32 = arith.constant -8192 : i32
    %14 = vector.broadcast %c-8192_i32 : i32 to vector<16x16xi32>
    %15 = arith.andi %13, %14 : vector<16x16xi32>
    %16 = tpu.bitcast %15 : vector<16x16xi32> -> vector<16x16xf32>
    %cst_7 = arith.constant 5.000000e-01 : f32
    %17 = vector.broadcast %cst_7 : f32 to vector<16x16xf32>
    %18 = arith.addf %5, %17 : vector<16x16xf32>
    %cst_8 = arith.constant 5.000000e-01 : f32
    %19 = vector.broadcast %cst_8 : f32 to vector<16x16xf32>
    %20 = arith.subf %18, %19 : vector<16x16xf32>
    %cst_9 = arith.constant 6.10351563E-5 : f32
    %21 = vector.broadcast %cst_9 : f32 to vector<16x16xf32>
    %22 = arith.cmpf oge, %5, %21 : vector<16x16xf32>
    %23 = arith.select %22, %16, %20 : vector<16x16xi1>, vector<16x16xf32>
    %c0_10 = arith.constant 0 : index
    %c0_11 = arith.constant 0 : index
    %c0_12 = arith.constant 0 : index
    %c0_13 = arith.constant 0 : index
    %24 = vector.load %arg2[%c0_10, %c0_11, %c0_12, %c0_13] : memref<1x4x16x16xf32, #tpu.memory_space<vmem>>, vector<1x1x16x16xf32>
    %25 = vector.shape_cast %24 : vector<1x1x16x16xf32> to vector<16x16xf32>
    %26 = arith.subf %25, %23 : vector<16x16xf32>
    %27 = arith.mulf %26, %26 : vector<16x16xf32>
    %28 = vector.shape_cast %27 : vector<16x16xf32> to vector<1x16x16xf32>
    %cst_14 = arith.constant dense<0.000000e+00> : vector<1xf32>
    %29 = vector.multi_reduction <add>, %28, %cst_14 [1, 2] : vector<1x16x16xf32> to vector<1xf32>
    %30 = vector.shape_cast %29 : vector<1xf32> to vector<1x1x1xf32>
    %31 = vector.extract %30[0, 0, 0] : f32 from vector<1x1x1xf32>
    %cst_15 = arith.constant 0.000000e+00 : f32
    %32 = arith.addf %cst_15, %31 : f32
    %33 = vector.shape_cast %25 : vector<16x16xf32> to vector<1x16x16xf32>
    %cst_16 = arith.constant dense<0.000000e+00> : vector<1xf32>
    %34 = vector.multi_reduction <add>, %33, %cst_16 [1, 2] : vector<1x16x16xf32> to vector<1xf32>
    %35 = vector.shape_cast %34 : vector<1xf32> to vector<1x1x1xf32>
    %36 = vector.extract %35[0, 0, 0] : f32 from vector<1x1x1xf32>
    %cst_17 = arith.constant 0.000000e+00 : f32
    %37 = arith.addf %cst_17, %36 : f32
    %c0_18 = arith.constant 0 : index
    %c1 = arith.constant 1 : index
    %c0_19 = arith.constant 0 : index
    %c0_20 = arith.constant 0 : index
    %38 = vector.load %arg2[%c0_18, %c1, %c0_19, %c0_20] : memref<1x4x16x16xf32, #tpu.memory_space<vmem>>, vector<1x1x16x16xf32>
    %39 = vector.shape_cast %38 : vector<1x1x16x16xf32> to vector<16x16xf32>
    %40 = arith.subf %39, %23 : vector<16x16xf32>
    %41 = arith.mulf %40, %40 : vector<16x16xf32>
    %42 = vector.shape_cast %41 : vector<16x16xf32> to vector<1x16x16xf32>
    %cst_21 = arith.constant dense<0.000000e+00> : vector<1xf32>
    %43 = vector.multi_reduction <add>, %42, %cst_21 [1, 2] : vector<1x16x16xf32> to vector<1xf32>
    %44 = vector.shape_cast %43 : vector<1xf32> to vector<1x1x1xf32>
    %45 = vector.extract %44[0, 0, 0] : f32 from vector<1x1x1xf32>
    %46 = arith.addf %32, %45 : f32
    %47 = vector.shape_cast %39 : vector<16x16xf32> to vector<1x16x16xf32>
    %cst_22 = arith.constant dense<0.000000e+00> : vector<1xf32>
    %48 = vector.multi_reduction <add>, %47, %cst_22 [1, 2] : vector<1x16x16xf32> to vector<1xf32>
    %49 = vector.shape_cast %48 : vector<1xf32> to vector<1x1x1xf32>
    %50 = vector.extract %49[0, 0, 0] : f32 from vector<1x1x1xf32>
    %51 = arith.addf %37, %50 : f32
    %c0_23 = arith.constant 0 : index
    %c2 = arith.constant 2 : index
    %c0_24 = arith.constant 0 : index
    %c0_25 = arith.constant 0 : index
    %52 = vector.load %arg2[%c0_23, %c2, %c0_24, %c0_25] : memref<1x4x16x16xf32, #tpu.memory_space<vmem>>, vector<1x1x16x16xf32>
    %53 = vector.shape_cast %52 : vector<1x1x16x16xf32> to vector<16x16xf32>
    %54 = arith.subf %53, %23 : vector<16x16xf32>
    %55 = arith.mulf %54, %54 : vector<16x16xf32>
    %56 = vector.shape_cast %55 : vector<16x16xf32> to vector<1x16x16xf32>
    %cst_26 = arith.constant dense<0.000000e+00> : vector<1xf32>
    %57 = vector.multi_reduction <add>, %56, %cst_26 [1, 2] : vector<1x16x16xf32> to vector<1xf32>
    %58 = vector.shape_cast %57 : vector<1xf32> to vector<1x1x1xf32>
    %59 = vector.extract %58[0, 0, 0] : f32 from vector<1x1x1xf32>
    %60 = arith.addf %46, %59 : f32
    %61 = vector.shape_cast %53 : vector<16x16xf32> to vector<1x16x16xf32>
    %cst_27 = arith.constant dense<0.000000e+00> : vector<1xf32>
    %62 = vector.multi_reduction <add>, %61, %cst_27 [1, 2] : vector<1x16x16xf32> to vector<1xf32>
    %63 = vector.shape_cast %62 : vector<1xf32> to vector<1x1x1xf32>
    %64 = vector.extract %63[0, 0, 0] : f32 from vector<1x1x1xf32>
    %65 = arith.addf %51, %64 : f32
    %c0_28 = arith.constant 0 : index
    %c3 = arith.constant 3 : index
    %c0_29 = arith.constant 0 : index
    %c0_30 = arith.constant 0 : index
    %66 = vector.load %arg2[%c0_28, %c3, %c0_29, %c0_30] : memref<1x4x16x16xf32, #tpu.memory_space<vmem>>, vector<1x1x16x16xf32>
    %67 = vector.shape_cast %66 : vector<1x1x16x16xf32> to vector<16x16xf32>
    %68 = arith.subf %67, %23 : vector<16x16xf32>
    %69 = arith.mulf %68, %68 : vector<16x16xf32>
    %70 = vector.shape_cast %69 : vector<16x16xf32> to vector<1x16x16xf32>
    %cst_31 = arith.constant dense<0.000000e+00> : vector<1xf32>
    %71 = vector.multi_reduction <add>, %70, %cst_31 [1, 2] : vector<1x16x16xf32> to vector<1xf32>
    %72 = vector.shape_cast %71 : vector<1xf32> to vector<1x1x1xf32>
    %73 = vector.extract %72[0, 0, 0] : f32 from vector<1x1x1xf32>
    %74 = arith.addf %60, %73 : f32
    %75 = vector.shape_cast %67 : vector<16x16xf32> to vector<1x16x16xf32>
    %cst_32 = arith.constant dense<0.000000e+00> : vector<1xf32>
    %76 = vector.multi_reduction <add>, %75, %cst_32 [1, 2] : vector<1x16x16xf32> to vector<1xf32>
    %77 = vector.shape_cast %76 : vector<1xf32> to vector<1x1x1xf32>
    %78 = vector.extract %77[0, 0, 0] : f32 from vector<1x1x1xf32>
    %79 = arith.addf %65, %78 : f32
    %80 = vector.shape_cast %23 : vector<16x16xf32> to vector<1x16x16xf32>
    %cst_33 = arith.constant dense<0.000000e+00> : vector<1xf32>
    %81 = vector.multi_reduction <add>, %80, %cst_33 [1, 2] : vector<1x16x16xf32> to vector<1xf32>
    %82 = vector.shape_cast %81 : vector<1xf32> to vector<1x1x1xf32>
    %83 = vector.extract %82[0, 0, 0] : f32 from vector<1x1x1xf32>
    %84 = tpu.iota {dimensions = array<i32: 1>} : vector<8x128xi32>
    %85 = tpu.iota {dimensions = array<i32: 0>} : vector<8x128xi32>
    %c0_i32 = arith.constant 0 : i32
    %86 = vector.broadcast %c0_i32 : i32 to vector<8x128xi32>
    %87 = arith.cmpi eq, %85, %86 : vector<8x128xi32>
    %c0_i32_34 = arith.constant 0 : i32
    %88 = vector.broadcast %c0_i32_34 : i32 to vector<8x128xi32>
    %89 = arith.cmpi eq, %84, %88 : vector<8x128xi32>
    %90 = arith.andi %87, %89 : vector<8x128xi1>
    %c1_i32_35 = arith.constant 1 : i32
    %91 = vector.broadcast %c1_i32_35 : i32 to vector<8x128xi32>
    %92 = arith.cmpi eq, %84, %91 : vector<8x128xi32>
    %93 = arith.andi %87, %92 : vector<8x128xi1>
    %c2_i32 = arith.constant 2 : i32
    %94 = vector.broadcast %c2_i32 : i32 to vector<8x128xi32>
    %95 = arith.cmpi eq, %84, %94 : vector<8x128xi32>
    %96 = arith.andi %87, %95 : vector<8x128xi1>
    %cst_36 = arith.constant 0.000000e+00 : f32
    %97 = vector.broadcast %83 : f32 to vector<8x128xf32>
    %98 = vector.broadcast %cst_36 : f32 to vector<8x128xf32>
    %99 = arith.select %96, %97, %98 : vector<8x128xi1>, vector<8x128xf32>
    %100 = vector.broadcast %79 : f32 to vector<8x128xf32>
    %101 = arith.select %93, %100, %99 : vector<8x128xi1>, vector<8x128xf32>
    %102 = vector.broadcast %74 : f32 to vector<8x128xf32>
    %103 = arith.select %90, %102, %101 : vector<8x128xi1>, vector<8x128xf32>
    %c0_37 = arith.constant 0 : index
    %c0_38 = arith.constant 0 : index
    %c0_39 = arith.constant 0 : index
    %104 = vector.load %arg5[%c0_37, %c0_38, %c0_39] : memref<1x8x128xf32, #tpu.memory_space<vmem>>, vector<1x8x128xf32>
    %105 = vector.shape_cast %104 : vector<1x8x128xf32> to vector<8x128xf32>
    %106 = vector.shape_cast %103 : vector<8x128xf32> to vector<1x8x128xf32>
    tpu.vector_store %arg5[%c0_37, %c0_38, %c0_39], %106 {strides = array<i32>} : memref<1x8x128xf32, #tpu.memory_space<vmem>>, vector<1x8x128xf32>,
    return
  }
  func.func @transform_0(%arg0: i32) -> (i32, i32, i32) {
    %c0_i32 = arith.constant 0 : i32
    %c0_i32_0 = arith.constant 0 : i32
    %c0_i32_1 = arith.constant 0 : i32
    return %arg0, %c0_i32, %c0_i32_0 : i32, i32, i32
  }
  func.func @transform_1(%arg0: i32) -> (i32, i32, i32, i32) {
    %c0_i32 = arith.constant 0 : i32
    %c0_i32_0 = arith.constant 0 : i32
    %c0_i32_1 = arith.constant 0 : i32
    %c0_i32_2 = arith.constant 0 : i32
    return %arg0, %c0_i32, %c0_i32_0, %c0_i32_1 : i32, i32, i32, i32
  }
  func.func @transform_2(%arg0: i32) -> (i32, i32) {
    %c0_i32 = arith.constant 0 : i32
    %c0_i32_0 = arith.constant 0 : i32
    %c0_i32_1 = arith.constant 0 : i32
    return %c0_i32, %c0_i32_0 : i32, i32
  }
  func.func @transform_3(%arg0: i32) -> (i32, i32) {
    %c0_i32 = arith.constant 0 : i32
    %c0_i32_0 = arith.constant 0 : i32
    %c0_i32_1 = arith.constant 0 : i32
    return %c0_i32, %c0_i32_0 : i32, i32
  }
  func.func @transform_4(%arg0: i32) -> (i32, i32, i32) {
    %c0_i32 = arith.constant 0 : i32
    %c0_i32_0 = arith.constant 0 : i32
    %c0_i32_1 = arith.constant 0 : i32
    return %arg0, %c0_i32, %c0_i32_0 : i32, i32, i32
  }
}

</mosaic_0001>

<bundles_post_ra>
// kernel: _dmap_loss_impl.1
= control target key start
LH: loop header
LB: loop body
LE: loop exit
PB: predicated region body
PF: predicated region fallthrough
CT: control target
= control target key end

     0   :  { %s740_s15 = smov 0   ;;  %s809_s0 = inlined_call_operand.vmem [shape: f32[2,16,16], index: 0, kind: input, shape index: {}]   ;;  %s810_s1 = inlined_call_operand.vmem [shape: f32[2,4,16,16], index: 1, kind: input, shape index: {}]   ;;  %s811_s2 = inlined_call_operand.vmem [shape: f32[16,16], index: 2, kind: input, shape index: {}, may-alias: {2,3}]   ;;  %s812_s3 = inlined_call_operand.vmem [shape: f32[16,16], index: 3, kind: input, shape index: {}, may-alias: {2,3}]   ;;  %s813_s4 = inlined_call_operand.vmem [shape: f32[2,8,128], index: 4, kind: output, shape index: {}]  }
   0x1 LB: > { %s633_s16 = sadd.s32 4294967295, %s713_s15   ;;  %p637_p0 = scmp.ge.s32.totalorder %s713_s15, 1  ;;  %s713_s15 = sphi %s740_s15, %s14_s15  }
   0x2   : > { %p172_p1 = scmp.lt.s32.totalorder %s713_s15, 3 }
   0x4   : > { %p173_p2 = pnand %p637_p0, %p172_p1 }
   0x5   : > { %p202_p3 = scmp.lt.s32.totalorder (!%p173_p2), %s633_s16, 1 }
   0x6   : > { %176 = sbr.rel (%p173_p2) target bundleno = 643 (0x283), region = 36 }
   0xb   : > { %v218_v0 = vld [vmem:[%s811_s2] sm:$0xff]  ;;  %vm220_vm0 = vcmask 130048   ;;  %s815_s16 = smov (!%p202_p3, %s633_s16), 1  ;;  %v219_v3 = vld [vmem:[%s811_s2 + $0x8] sm:$0xff] }
   0xc   : > { %671 = vmatprep.mubr.msk.f32.mxu0 %vm220_vm0, %v218_v0  ;;  %s657_s19 = sshll.u32 %s815_s16, 4  ;;  %v303_v4 = vld [vmem:[%s812_s3 + $0x8] sm:$0xff]  ;;  %v302_v5 = vld [vmem:[%s812_s3] sm:$0xff]  ;;  %s658_s29 = sshll.u32 %s815_s16, 6 }
   0xd   : > { %s206_s22 = scalar_lea.vmem %s809_s0, %s657_s19  ;;  %674 = vmatprep.subr.mxu1 %v303_v4  ;;  %s774_s6 = scalar_lea.vmem %s810_s1, %s658_s29 }
   0xe   : > { %v217_v1 = vld [vmem:[%s206_s22 + $0x8] sm:$0xff]  ;;  %v216_v2 = vld [vmem:[%s206_s22] sm:$0xff]  ;;  %675 = vmatpush3.msra.mxu1 %v303_v4  ;;  %v649_v13 = vld [vmem:[%s774_s6 + $0x10] sm:$0xff]  ;;  %s642_s23 = sshll.u32 %s815_s16, 3 }
   0xf   : > { %667 = vmatprep.subr.mxu0 %v217_v1  ;;  %676 = vmatprep.subr.mxu1 %v302_v5  ;;  %v407_v8 = vld [vmem:[%s774_s6] sm:$0xff]  ;;  %v408_v9 = vld [vmem:[%s774_s6 + $0x8] sm:$0xff]  ;;  %v650_v14 = vld [vmem:[%s774_s6 + $0x18] sm:$0xff]  ;;  %v459_v15 = vsel %vm220_vm0, %v649_v13, 0.0  ;;  %s215_s27 = scalar_lea.vmem %s813_s4, %s642_s23 }
  0x10   : > { %668 = vmatpush3.msra.mxu0 %v217_v1  ;;  %677 = vmatpush3.msra.mxu1 %v302_v5  ;;  %v426_v10 = vsel %vm220_vm0, %v407_v8, 0.0  ;;  %v427_v11 = vsel %vm220_vm0, %v408_v9, 0.0  ;;  %v460_v16 = vsel %vm220_vm0, %v650_v14, 0.0  ;;  %v651_v18 = vld [vmem:[%s774_s6 + $0x20] sm:$0xff]  ;;  %v652_v19 = vld [vmem:[%s774_s6 + $0x28] sm:$0xff]  ;;  %v653_v44 = vld [vmem:[%s774_s6 + $0x30] sm:$0xff] }
  0x11   : > { %669 = vmatprep.subr.mxu0 %v216_v2  ;;  %v428_v12 = vadd.f32 %v427_v11, %v426_v10  ;;  %v461_v17 = vadd.f32 %v460_v16, %v459_v15  ;;  %v492_v20 = vsel %vm220_vm0, %v651_v18, 0.0  ;;  %v493_v21 = vsel %vm220_vm0, %v652_v19, 0.0  ;;  %v654_v49 = vld [vmem:[%s774_s6 + $0x38] sm:$0xff] }
  0x12   : > { %670 = vmatpush3.msra.mxu0 %v216_v2  ;;  %v494_v22 = vadd.f32 %v493_v21, %v492_v20  ;;  %v525_v54 = vsel %vm220_vm0, %v653_v44, 0.0  ;;  %v526_v58 = vsel %vm220_vm0, %v654_v49, 0.0 }
  0x13   : > { %672 = vmatmul.mubr.msk.f32.vlgmr.msra.gmra.mxu0 %vm220_vm0, %v219_v3  ;;  %429 = vadd.xlane.f32.xlu0 %v428_v12  ;;  %v527_v3 = vadd.f32 %v526_v58, %v525_v54 }
  0x14   : > { %462 = vadd.xlane.f32.xlu1 %v461_v17 }
  0x18   : > { %495 = vadd.xlane.f32.xlu1 %v494_v22 }
  0xd3   : > { %v673_v6 = vpop.f32.mrf.mxu0 }
  0xd5   : > { %v293_v7 = vpop.f32.mrf.mxu0 }
  0xd6   : > { %678 = vmatprep.mubr.msk.f32.mxu1 %vm220_vm0, %v293_v7 }
  0xd7   : > { %679 = vmatmul.mubr.msk.f32.vlgmr.msra.gmra.mxu1 %vm220_vm0, %v673_v6 }
 0x197   : > { %v680_v23 = vpop.f32.mrf.mxu1 }
 0x198   : > { %v388_v24 = vshrl.u32 %v680_v23, 13  ;;  %v392_v27 = vadd.s32 4095, %v680_v23  ;;  %v400_v28 = vadd.f32 0.5, %v680_v23  ;;  %vm404_vm1 = vcmp.ge.f32.partialorder %v680_v23, 6.1035156e-05 }
 0x199   : > { %v376_v25 = vpop.f32.mrf.mxu1 }
 0x19a   : > { %v390_v26 = vand.u32 1, %v388_v24  ;;  %v387_v29 = vshrl.u32 %v376_v25, 13  ;;  %v391_v32 = vadd.s32 4095, %v376_v25  ;;  %v399_v33 = vadd.f32 0.5, %v376_v25 }
 0x19b   : > { %v648_v35 = vadd.f32 -0.5, %v400_v28  ;;  %vm403_vm2 = vcmp.ge.f32.partialorder %v376_v25, 6.1035156e-05 }
 0x19c   : > { %v394_v30 = vadd.s32 %v392_v27, %v390_v26  ;;  %v389_v31 = vand.u32 1, %v387_v29  ;;  %v647_v39 = vadd.f32 -0.5, %v399_v33 }
 0x19e   : > { %v396_v34 = vand.u32 4294959104, %v394_v30  ;;  %v393_v36 = vadd.s32 %v391_v32, %v389_v31 }
 0x1a0   : > { %v406_v37 = vsel %vm404_vm1, %v396_v34, %v648_v35  ;;  %v395_v38 = vand.u32 4294959104, %v393_v36 }
 0x1a1   : > { %v410_v40 = vsub.f32 %v408_v9, %v406_v37  ;;  %v443_v41 = vsub.f32 %v650_v14, %v406_v37  ;;  %v476_v43 = vsub.f32 %v652_v19, %v406_v37  ;;  %v509_v57 = vsub.f32 %v654_v49, %v406_v37  ;;  %v430_v14 = vpop.xlane.xlu0 %429 }
 0x1a2   : > { %v405_v42 = vsel %vm403_vm2, %v395_v38, %v647_v39  ;;  %v539_v11 = vsel %vm220_vm0, %v406_v37, 0.0  ;;  %v431_v15 = vrot.slane %v430_v14, 4 }
 0x1a3   : > { %v409_v45 = vsub.f32 %v407_v8, %v405_v42  ;;  %v412_v46 = vmul.f32 %v410_v40, %v410_v40  ;;  %v442_v47 = vsub.f32 %v649_v13, %v405_v42  ;;  %v445_v48 = vmul.f32 %v443_v41, %v443_v41  ;;  %v463_v13 = vpop.xlane.xlu1 %462 }
 0x1a4   : > { %v475_v50 = vsub.f32 %v651_v18, %v405_v42  ;;  %v508_v53 = vsub.f32 %v653_v44, %v405_v42  ;;  %v478_v56 = vmul.f32 %v476_v43, %v476_v43  ;;  %v511_v5 = vmul.f32 %v509_v57, %v509_v57 }
 0x1a5   : > { %v411_v51 = vmul.f32 %v409_v45, %v409_v45  ;;  %v444_v52 = vmul.f32 %v442_v47, %v442_v47  ;;  %v447_v60 = vsel %vm220_vm0, %v445_v48, 0.0  ;;  %v414_v62 = vsel %vm220_vm0, %v412_v46, 0.0 }
 0x1a6   : > { %v477_v55 = vmul.f32 %v475_v50, %v475_v50  ;;  %v510_v2 = vmul.f32 %v508_v53, %v508_v53  ;;  %v480_v4 = vsel %vm220_vm0, %v478_v56, 0.0  ;;  %v513_v8 = vsel %vm220_vm0, %v511_v5, 0.0 }
 0x1a7   : > { %v446_v59 = vsel %vm220_vm0, %v444_v52, 0.0  ;;  %v413_v61 = vsel %vm220_vm0, %v411_v51, 0.0  ;;  %v538_v10 = vsel %vm220_vm0, %v405_v42, 0.0  ;;  %v496_v16 = vpop.xlane.xlu1 %495  ;;  %v464_v17 = vrot.slane %v463_v13, 4 }
 0x1a8   : > { %v448_v63 = vadd.f32 %v447_v60, %v446_v59  ;;  %v415_v0 = vadd.f32 %v414_v62, %v413_v61  ;;  %v479_v1 = vsel %vm220_vm0, %v477_v55, 0.0  ;;  %v512_v7 = vsel %vm220_vm0, %v510_v2, 0.0 }
 0x1a9   : > { %v481_v6 = vadd.f32 %v480_v4, %v479_v1  ;;  %v514_v9 = vadd.f32 %v513_v8, %v512_v7  ;;  %v540_v12 = vadd.f32 %v539_v11, %v538_v10  ;;  %v432_v18 = vadd.f32 %v431_v15, %v430_v14 }
 0x1aa   : > { %449 = vadd.xlane.f32.xlu1 %v448_v63  ;;  %416 = vadd.xlane.f32.xlu0 %v415_v0  ;;  %v497_v19 = vrot.slane %v496_v16, 4  ;;  %v465_v20 = vadd.f32 %v464_v17, %v463_v13 }
 0x1ab   : > { %v433_v21 = vrot.slane %v432_v18, 2 }
 0x1ac   : > { %v498_v22 = vadd.f32 %v497_v19, %v496_v16  ;;  %v466_v27 = vrot.slane %v465_v20, 2 }
 0x1ad   : > { %v434_v33 = vadd.f32 %v433_v21, %v432_v18 }
 0x1ae   : > { %482 = vadd.xlane.f32.xlu0 %v481_v6  ;;  %528 = vadd.xlane.f32.xlu1 %v527_v3  ;;  %v499_v30 = vrot.slane %v498_v22, 2  ;;  %v467_v38 = vadd.f32 %v466_v27, %v465_v20 }
 0x1af   : > { %v435_v44 = vrot.slane %v434_v33, 1 }
 0x1b0   : > { %v500_v45 = vadd.f32 %v499_v30, %v498_v22  ;;  %v468_v51 = vrot.slane %v467_v38, 1 }
 0x1b1   : > { %v436_v57 = vadd.f32 %v435_v44, %v434_v33 }
 0x1b2   : > { %515 = vadd.xlane.f32.xlu0 %v514_v9  ;;  %v501_v59 = vrot.slane %v500_v45, 1  ;;  %v469_v63 = vadd.f32 %v468_v51, %v467_v38 }
 0x1b4   : > { %v502_v3 = vadd.f32 %v501_v59, %v500_v45 }
 0x1b6   : > { %541 = vadd.xlane.f32.xlu0 %v540_v12  ;;  %v550_v12 = vlaneseq }
 0x1b8   : > { %v551_v13 = vand.u32 127, %v550_v12  ;;  %v553_v14 = vshrl.u32 %v550_v12, 7 }
 0x1ba   : > { %vm554_vm3 = vcmp.eq.s32.totalorder %v553_v14, 0  ;;  %vm559_vm4 = vcmp.eq.s32.totalorder %v551_v13, 2  ;;  %vm557_vm5 = vcmp.eq.s32.totalorder %v551_v13, 1  ;;  %vm555_vm6 = vcmp.eq.s32.totalorder %v551_v13, 0 }
 0x1bb   : > { %vm560_vm7 = vmand %vm554_vm3, %vm559_vm4 }
 0x1bc   : > { %vm558_vm8 = vmand %vm554_vm3, %vm557_vm5 }
 0x1bd   : > { %vm556_vm9 = vmand %vm554_vm3, %vm555_vm6 }
 0x233   : > { %v450_v23 = vpop.xlane.xlu1 %449  ;;  %v417_v24 = vpop.xlane.xlu0 %416 }
 0x234   : > { %v451_v25 = vrot.slane %v450_v23, 4  ;;  %v418_v26 = vrot.slane %v417_v24, 4 }
 0x236   : > { %v452_v28 = vadd.f32 %v451_v25, %v450_v23  ;;  %v419_v29 = vadd.f32 %v418_v26, %v417_v24 }
 0x237   : > { %v483_v31 = vpop.xlane.xlu0 %482  ;;  %v529_v32 = vpop.xlane.xlu1 %528 }
 0x238   : > { %v453_v34 = vrot.slane %v452_v28, 2  ;;  %v420_v35 = vrot.slane %v419_v29, 2  ;;  %v484_v36 = vrot.slane %v483_v31, 4  ;;  %v530_v37 = vrot.slane %v529_v32, 4 }
 0x23a   : > { %v485_v39 = vadd.f32 %v484_v36, %v483_v31  ;;  %v531_v40 = vadd.f32 %v530_v37, %v529_v32  ;;  %v421_v41 = vadd.f32 %v420_v35, %v419_v29  ;;  %v454_v42 = vadd.f32 %v453_v34, %v452_v28 }
 0x23b   : > { %v516_v43 = vpop.xlane.xlu0 %515 }
 0x23c   : > { %v486_v46 = vrot.slane %v485_v39, 2  ;;  %v532_v47 = vrot.slane %v531_v40, 2  ;;  %v517_v48 = vrot.slane %v516_v43, 4  ;;  %v422_v49 = vrot.slane %v421_v41, 1 }
 0x23d   : > { %v455_v50 = vrot.slane %v454_v42, 1 }
 0x23e   : > { %v518_v52 = vadd.f32 %v517_v48, %v516_v43  ;;  %v423_v53 = vadd.f32 %v422_v49, %v421_v41  ;;  %v487_v54 = vadd.f32 %v486_v46, %v485_v39  ;;  %v533_v55 = vadd.f32 %v532_v47, %v531_v40 }
 0x23f   : > { %v542_v56 = vpop.xlane.xlu0 %541  ;;  %v456_v58 = vadd.f32 %v455_v50, %v454_v42 }
 0x240   : > { %v519_v60 = vrot.slane %v518_v52, 2  ;;  %v543_v61 = vrot.slane %v542_v56, 4  ;;  %681 = vpush %v423_v53  ;;  %v488_v62 = vrot.slane %v487_v54, 1  ;;  %v534_v4 = vrot.slane %v533_v55, 1 }
 0x241   : > { %683 = vpush %v436_v57 }
 0x242   : > { %v544_v0 = vadd.f32 %v543_v61, %v542_v56  ;;  %685 = vpush %v456_v58  ;;  %v489_v1 = vadd.f32 %v488_v62, %v487_v54  ;;  %v520_v2 = vadd.f32 %v519_v60, %v518_v52  ;;  %v535_v9 = vadd.f32 %v534_v4, %v533_v55 }
 0x243   : > { %687 = vpush %v469_v63 }
 0x244   : > { %v545_v5 = vrot.slane %v544_v0, 2  ;;  %689 = vpush %v489_v1  ;;  %v521_v6 = vrot.slane %v520_v2, 1 }
 0x245   : > { %691 = vpush %v502_v3 }
 0x246   : > { %v546_v7 = vadd.f32 %v545_v5, %v544_v0  ;;  %v522_v8 = vadd.f32 %v521_v6, %v520_v2 }
 0x248   : > { %693 = vpush %v522_v8  ;;  %v547_v10 = vrot.slane %v546_v7, 1 }
 0x249   : > { %695 = vpush %v535_v9 }
 0x24a   : > { %v548_v11 = vadd.f32 %v547_v10, %v546_v7 }
 0x24c   : > { %697 = vpush %v548_v11 }
 0x271   : > { %s682_s7 = spop %681 }
 0x272   : > { %s684_s8 = spop %683 }
 0x273   : > { %s686_s9 = spop %685 }
 0x274   : > { %s688_s10 = spop %687  ;;  %s458_s14 = sadd.f32 %s686_s9, %s682_s7 }
 0x275   : > { %s690_s11 = spop %689  ;;  %s471_s13 = sadd.f32 %s688_s10, %s684_s8 }
 0x276   : > { %s692_s12 = spop %691  ;;  %s491_s19 = sadd.f32 %s690_s11, %s458_s14 }
 0x277   : > { %s504_s17 = sadd.f32 %s692_s12, %s471_s13 }
 0x279   : > { %s694_s18 = spop %693 }
 0x27a   : > { %s696_s20 = spop %695  ;;  %s524_s22 = sadd.f32 %s694_s18, %s491_s19 }
 0x27b   : > { %s537_s21 = sadd.f32 %s696_s20, %s504_s17 }
 0x27c   : > { %v565_v18 = vstv %s524_s22 }
 0x27d   : > { %s698_s24 = spop %697  ;;  %v563_v16 = vstv %s537_s21 }
 0x27e   : > { %v561_v15 = vstv %s698_s24 }
 0x27f   : > { %v562_v17 = vsel %vm560_vm7, %v561_v15, 0.0 }
 0x280   : > { %v564_v19 = vsel %vm558_vm8, %v563_v16, %v562_v17 }
 0x281   : > { %v566_v20 = vsel %vm556_vm9, %v565_v18, %v564_v19 }
 0x282   : > { %567 = vst [vmem:[%s215_s27] sm:$0xff] %v566_v20 }
 0x283 PF: > { %s14_s15 = sadd.s32 1, %s713_s15  }
 0x284   : > { %p11_p4 = scmp.ge.s32.totalorder %s14_s15, 4  }
 0x286   :  { %13 = sbr.rel (!%p11_p4) target bundleno = 1 (0x1), region = 72 }

</bundles_post_ra>
